<compile_context>
chip_gen: v7x
topology: tpu7x:2x2x1
jax: 0.10.0
libtpu: 0.0.40
codegen_flags: <defaults>
</compile_context>

<pallas_src>
import jax
import jax.numpy as jnp
from jax.experimental import pallas as pl
from jax.experimental.pallas import tpu as pltpu


def _round_up(x, m):
    return (x + m - 1) // m * m


def _dk_text_kernel(q_ref, w_ref, b_ref, o_ref):
    # q_ref:  (tm, q_dim)       VMEM tile of flattened activations
    # w_ref:  (q_dim, k_v_dim)  full weight (transposed vs. torch Linear), grid-invariant
    # b_ref:  (1, k_v_dim)      bias row, grid-invariant
    # o_ref:  (tm, k_v_dim)     output tile
    acc = jnp.dot(q_ref[...], w_ref[...], preferred_element_type=jnp.float32)
    acc = acc + b_ref[...].astype(jnp.float32)
    o_ref[...] = jnp.tanh(acc).astype(o_ref.dtype)


def dk_text_forward(q, weight, bias, layer_no, *, tm=1024, out_dtype=None):
    """q: [B, S, q_dim]; weight: [q_dim, k_v_dim] (torch weight.T); bias: [k_v_dim]."""
    B, S, q_dim = q.shape
    k_v_dim = weight.shape[1]
    M = B * S
    out_dtype = q.dtype if out_dtype is None else out_dtype

    itemsize = jnp.dtype(q.dtype).itemsize
    out_itemsize = jnp.dtype(out_dtype).itemsize
    # Sublane packing granularity depends on dtype width (f32:8, bf16:16, int8/fp8:32).
    sublane = {4: 8, 2: 16, 1: 32}.get(itemsize, 8)

    # Row tile: as large as requested, but guarantee >= 2 grid steps when M allows so
    # the "parallel" grid axis can shard across v7x's two TensorCores.
    tm_eff = _round_up(min(tm, M), sublane)
    if M >= 2 * sublane:
        tm_eff = min(tm_eff, _round_up(pl.cdiv(M, 2), sublane))
    grid_m = pl.cdiv(M, tm_eff)

    # Metadata-only reshapes (no HBM pass).
    q2d = q.reshape(M, q_dim)
    b2d = bias.reshape(1, k_v_dim)

    # VMEM budget estimate (Mosaic pads minor dims to (sublane, 128) internally).
    k_pad = _round_up(q_dim, 128)
    n_pad = _round_up(k_v_dim, 128)
    est = (2 * tm_eff * k_pad * itemsize            # double-buffered activation tiles
           + 2 * tm_eff * n_pad * out_itemsize      # double-buffered output tiles
           + 2 * (k_pad * n_pad + n_pad) * itemsize)  # weight + bias buffers
    vmem_limit = int(min(max(2 * est, 32 * 1024 * 1024), 48 * 1024 * 1024))

    cost = pl.CostEstimate(
        flops=2 * M * q_dim * k_v_dim,
        transcendentals=M * k_v_dim,
        bytes_accessed=(M * q_dim * itemsize
                        + q_dim * k_v_dim * itemsize
                        + k_v_dim * itemsize
                        + M * k_v_dim * out_itemsize),
    )

    out2d = pl.pallas_call(
        _dk_text_kernel,
        out_shape=jax.ShapeDtypeStruct((M, k_v_dim), out_dtype),
        grid_spec=pltpu.PrefetchScalarGridSpec(
            num_scalar_prefetch=0,
            grid=(grid_m,),
            in_specs=[
                # Partial final row-block is masked by Pallas; K is the full array dim.
                pl.BlockSpec((tm_eff, q_dim), lambda i: (i, 0)),
                # Grid-invariant operands: same block every step -> fetched once.
                pl.BlockSpec((q_dim, k_v_dim), lambda i: (0, 0)),
                pl.BlockSpec((1, k_v_dim), lambda i: (0, 0)),
            ],
            out_specs=pl.BlockSpec((tm_eff, k_v_dim), lambda i: (i, 0)),
        ),
        compiler_params=pltpu.CompilerParams(
            dimension_semantics=("parallel",),
            vmem_limit_bytes=vmem_limit,
        ),
        cost_estimate=cost,
    )(q2d, weight, b2d)

    # Apply the unsqueeze metadata reshape:
    #   for i in range(1, layer_no + 2): q_i = q_i.unsqueeze(i)
    new_shape = (B,) + (1,) * (layer_no + 1) + (S, k_v_dim)
    return out2d.reshape(new_shape)


# TODO(synk): DK_fusion is not defined in the provided spec and the DKEncoder entity
# scatter (torch.nonzero-driven per-batch write-back) is data-dependent host-side
# indexing; only the DK_text linear+tanh hot path is implemented as a Pallas kernel.


if __name__ == "__main__":
    # Small, deterministic configuration consistent with the module's forward.
    B, S = 2, 8
    q_dim, k_v_dim = 32, 32
    layer_no = 2  # DKEncoderLayer assigns layer numbers in reverse order

    key = jax.random.PRNGKey(0)
    kq, kw, kb = jax.random.split(key, 3)
    q = jax.random.normal(kq, (B, S, q_dim), dtype=jnp.float32)
    # Deterministic parameter init (synthetic; mirrors nn.Linear(q_dim, k_v_dim))
    weight = jax.random.normal(kw, (q_dim, k_v_dim), dtype=jnp.float32) * 0.05
    bias = jax.random.normal(kb, (k_v_dim,), dtype=jnp.float32) * 0.05

    out = dk_text_forward(q, weight, bias, layer_no)
    out = jax.block_until_ready(out)

    # Sanity: shape must be [B, 1, ..., 1, S, k_v_dim] with layer_no+1 ones
    expected_shape = (B,) + (1,) * (layer_no + 1) + (S, k_v_dim)
    assert out.shape == expected_shape, (out.shape, expected_shape)

    # Reference check against plain JAX
    ref = jnp.tanh(q @ weight + bias).reshape(expected_shape)
    assert jnp.allclose(out, ref, atol=1e-5, rtol=1e-5)

    print("KERNEL_OK")
</pallas_src>

<mosaic_0001>
module attributes {stable_mosaic.version = 11 : i64} {
  func.func @_dk_text_kernel(%arg0: i32, %arg1: memref<8x32xf32, #tpu.memory_space<vmem>>, %arg2: memref<32x32xf32, #tpu.memory_space<vmem>>, %arg3: memref<1x32xf32, #tpu.memory_space<vmem>>, %arg4: memref<8x32xf32, #tpu.memory_space<vmem>>) attributes {dimension_semantics = [#tpu.dimension_semantics<parallel>], iteration_bounds = array<i64: 2>, scalar_prefetch = 0 : i64, scratch_operands = 0 : i64, tpu.core_type = #tpu.core_type<tc>, window_params = [{transform_indices = @transform_0, window_bounds = array<i64: 8, 32>}, {pipeline_mode = #tpu.pipeline_mode<synchronous>, transform_indices = @transform_1, window_bounds = array<i64: 32, 32>}, {pipeline_mode = #tpu.pipeline_mode<synchronous>, transform_indices = @transform_2, window_bounds = array<i64: 1, 32>}, {transform_indices = @transform_3, window_bounds = array<i64: 8, 32>}]} {
    %c0 = arith.constant 0 : index
    %c0_0 = arith.constant 0 : index
    %0 = vector.load %arg1[%c0, %c0_0] : memref<8x32xf32, #tpu.memory_space<vmem>>, vector<8x32xf32>
    %c0_1 = arith.constant 0 : index
    %c0_2 = arith.constant 0 : index
    %1 = vector.load %arg2[%c0_1, %c0_2] : memref<32x32xf32, #tpu.memory_space<vmem>>, vector<32x32xf32>
    %cst = arith.constant dense<0.000000e+00> : vector<8x32xf32>
    %2 = tpu.matmul %0, %1, %cst {dimension_numbers = #tpu.dot_dimension_numbers<[1], [0], [0], [1], [0, 0, 1, 1], [], []>} : vector<8x32xf32>, vector<32x32xf32>, vector<8x32xf32> -> vector<8x32xf32>
    %c0_3 = arith.constant 0 : index
    %c0_4 = arith.constant 0 : index
    %3 = vector.load %arg3[%c0_3, %c0_4] : memref<1x32xf32, #tpu.memory_space<vmem>>, vector<1x32xf32>
    %4 = vector.broadcast %3 : vector<1x32xf32> to vector<8x32xf32>
    %5 = arith.addf %2, %4 : vector<8x32xf32>
    %6 = math.tanh %5 : vector<8x32xf32>
    %c0_5 = arith.constant 0 : index
    %c0_6 = arith.constant 0 : index
    %7 = vector.load %arg4[%c0_5, %c0_6] : memref<8x32xf32, #tpu.memory_space<vmem>>, vector<8x32xf32>
    tpu.vector_store %arg4[%c0_5, %c0_6], %6 {strides = array<i32>} : memref<8x32xf32, #tpu.memory_space<vmem>>, vector<8x32xf32>,
    return
  }
  func.func @transform_0(%arg0: i32) -> (i32, i32) {
    %c0_i32 = arith.constant 0 : i32
    %c0_i32_0 = arith.constant 0 : i32
    return %arg0, %c0_i32 : i32, i32
  }
  func.func @transform_1(%arg0: i32) -> (i32, i32) {
    %c0_i32 = arith.constant 0 : i32
    %c0_i32_0 = arith.constant 0 : i32
    %c0_i32_1 = arith.constant 0 : i32
    return %c0_i32, %c0_i32_0 : i32, i32
  }
  func.func @transform_2(%arg0: i32) -> (i32, i32) {
    %c0_i32 = arith.constant 0 : i32
    %c0_i32_0 = arith.constant 0 : i32
    %c0_i32_1 = arith.constant 0 : i32
    return %c0_i32, %c0_i32_0 : i32, i32
  }
  func.func @transform_3(%arg0: i32) -> (i32, i32) {
    %c0_i32 = arith.constant 0 : i32
    %c0_i32_0 = arith.constant 0 : i32
    return %arg0, %c0_i32 : i32, i32
  }
}

</mosaic_0001>

<bundles_post_ra>
// kernel: tpu_custom_call.1
= control target key start
LH: loop header
LB: loop body
LE: loop exit
PB: predicated region body
PF: predicated region fallthrough
CT: control target
= control target key end

     0   :  { %8 = vsyncpa [#allocation3], 0  ;;  %s846_s0 = inlined_call_operand.hbm [shape: f32[16,32], index: 0, kind: input, shape index: {}]   ;;  %s847_s1 = inlined_call_operand.hbm [shape: f32[32,32], index: 1, kind: input, shape index: {}]   ;;  %s848_s2 = inlined_call_operand.vmem [shape: f32[1,32], index: 2, kind: input, shape index: {}]   ;;  %s849_s3 = inlined_call_operand.hbm [shape: f32[16,32], index: 3, kind: output, shape index: {}]  }
   0x1   :  { %10 = vsyncpa [#allocation3 + $0x1], 0 }
   0x2   :  { %11 = vsyncpa [#allocation6], 0 }
   0x3   :  { %12 = vsyncpa [#allocation4], 0 }
   0x4   :  { %14 = vsyncpa [#allocation4 + $0x1], 0  ;;  %s643_s12 = smov 0   ;;  %s645_s13 = smov 0  }
   0x5   :  { %s647_s14 = smov 0   ;;  %s649_s15 = smov 0  }
   0x6 LB: > { %s664_s16 = sadd.s32 4294967295, %s613_s15   ;;  %s383_s17 = sadd.s32 4294967294, %s613_s15   ;;  %s613_s15 = sphi %s649_s15, %s869_s15   ;;  %s609_s14 = sphi %s647_s14, %s868_s14   ;;  %s605_s13 = sphi %s645_s13, %s867_s13   ;;  %s601_s12 = sphi %s643_s12, %s866_s12  }
   0x7   : > { %p40_p0 = scmp.ne.s32.totalorder %s605_s13, %s601_s12  ;;  %p850_p1 = scmp.eq.s32.totalorder %s664_s16, 0 }
   0x8   : > { %p112_p3 = scmp.eq.s32.totalorder %s383_s17, 1  ;;  %p384_p5 = scmp.ge.s32.totalorder %s613_s15, 1 }
   0x9   : > { %p673_p4 = por %p850_p1, %p40_p0  ;;  %p119_p7 = scmp.lt.s32.totalorder %s613_s15, 3 }
   0xa   : > { %p678_p6 = por %p112_p3, %p40_p0  ;;  %s615_s21 = smov [#allocation5]  }
   0xb   : > { %s853_s18 = scalar_select %p673_p4, 1, 0 }
   0xc   : > { %s854_s19 = scalar_select %p678_p6, 1, 0 }
   0xd   : > { %p683_p8 = pnand %p384_p5, %p119_p7  ;;  %s131_s22 = sshll.u32 %s615_s21, 4  ;;  %s687_s22 = int_to_ptr.vmem [resolvable:$true] %s131_s22 }
   0xe   : > { %s699_s24 = sadd.s32 1, %s613_s15   ;;  %s27_s25 = sadd.s32 1, %s609_s14 }
   0xf   : > { %s855_s20 = scalar_select %p683_p8, 1, 0 }
  0x10   : > { %p429_p9 = pneg %p683_p8  ;;  %s24_s26 = ssub.s32 %s613_s15, %s699_s24 }
  0x11   : > { %s485_s29 = scalar_lea.hbm %s847_s1, 512 }
  0x12   : > { %p694_p11 = pnand %p429_p9, %p850_p1  ;;  %p486_p12 = scmp.ne.s32.totalorder %s847_s1, %s485_s29 }
  0x13   : > { %p492_p5 = scmp.lt.u32.totalorder %s485_s29, %s847_s1 }
  0x14   : > { %p487_p13 = pneg %p694_p11 }
  0x16   : > { %p488_p0 = pnand %p487_p13, %p486_p12 }
  0x18   : > { %p489_p3 = pneg %p488_p0 }
  0x1a   : > { %p494_p7 = pnand %p492_p5, %p489_p3 }
  0x1c   : > { %497 = shalt.err (!%p494_p7)
}
  0x1d   : > { %s498_s7 = scalar_lea.vmem %s687_s22, 512  ;;  %p506_p2 = scmp.lt.s32.totalorder %s687_s22, %s687_s22 }
  0x1e   : > { %p499_p9 = scmp.ne.s32.totalorder %s687_s22, %s498_s7  ;;  %p507_p6 = scmp.lt.s32.totalorder %s498_s7, %s498_s7 }
  0x20   : > { %p501_p10 = pnand %p499_p9, %p487_p13  ;;  %p508_p4 = por %p507_p6, %p506_p2 }
  0x22   : > { %p502_p1 = pneg %p501_p10 }
  0x24   : > { %p509_p8 = pnand %p508_p4, %p502_p1 }
  0x26   : > { %512 = shalt.err (!%p509_p8)
}
  0x27   : > { %s616_s8 = smov 128   ;;  %s617_s9 = smov 8  }
  0x28   : > { %432 = dma.hbm_to_vmem [thread:$0]  (!%p694_p11), %s847_s1, 512, %s687_s22, [#allocation6], %s616_s8, %s616_s8, %s617_s9  }
  0x29   : > { %p25_p2 = scmp.eq.s32.totalorder %s24_s26, 0  ;;  %p34_p1 = scmp.ne.s32.totalorder %s609_s14, %s605_s13 }
  0x2a   : > { %p35_p4 = scmp.eq.s32.totalorder %s613_s15, 0  ;;  %p442_p6 = scmp.lt.s32.totalorder %s613_s15, 2 }
  0x2b   : > { %s730_s17 = scalar_select %p25_p2, %s609_s14, %s27_s25  }
  0x2c   : > { %p36_p8 = por %p35_p4, %p34_p1  ;;  %p857_p10 = scmp.eq.s32.totalorder %s664_s16, 1 }
  0x2d   : > { %s148_s27 = sand.u32 1, %s609_s14   ;;  %s388_s28 = sshll.u32 %s613_s15, 7 }
  0x2e   : > { %p734_p12 = por %p857_p10, %p34_p1  ;;  %s387_s29 = sshll.u32 %s148_s27, 3 }
  0x2f   : > { %s743_s4 = scalar_lea.hbm %s846_s0, %s388_s28  ;;  %s152_s22 = scalar_lea.vmem [#allocation2], %s387_s29 }
  0x30   : > { %s159_s25 = sshll.u32 %s152_s22, 4  ;;  %p745_p11 = pnand %p442_p6, %p36_p8  ;;  %s749_s25 = int_to_ptr.vmem [resolvable:$true] %s159_s25 }
  0x31   : > { %s149_s5 = scalar_lea.sflag [#allocation3], %s148_s27  ;;  %s513_s6 = scalar_lea.hbm %s743_s4, 128 }
  0x32   : > { %p514_p13 = scmp.ne.s32.totalorder %s743_s4, %s513_s6  ;;  %p515_p0 = pneg %p745_p11 }
  0x33   : > { %s518_s9 = scalar_lea.hbm %s846_s0, 256  ;;  %p519_p7 = scmp.lt.u32.totalorder %s743_s4, %s846_s0 }
  0x34   : > { %p516_p3 = pnand %p515_p0, %p514_p13  ;;  %p520_p9 = scmp.lt.u32.totalorder %s518_s9, %s513_s6 }
  0x35   : > { %p522_p1 = scmp.lt.u32.totalorder %s513_s6, %s743_s4 }
  0x36   : > { %p517_p5 = pneg %p516_p3  ;;  %p521_p2 = por %p520_p9, %p519_p7 }
  0x38   : > { %p523_p4 = por %p522_p1, %p521_p2 }
  0x3a   : > { %p524_p6 = pnand %p523_p4, %p517_p5 }
  0x3c   : > { %527 = shalt.err (!%p524_p6)
}
  0x3d   : > { %s528_s27 = scalar_lea.vmem %s749_s25, 128  ;;  %s618_s28 = smov [#allocation2]  }
  0x3e   : > { %p529_p8 = scmp.ne.s32.totalorder %s749_s25, %s528_s27  ;;  %s533_s29 = sshll.u32 %s618_s28, 4  ;;  %s534_s29 = int_to_ptr.vmem [resolvable:$false] %s533_s29 }
  0x3f   : > { %s535_s23 = scalar_lea.vmem %s534_s29, 256  ;;  %p536_p3 = scmp.lt.s32.totalorder %s749_s25, %s534_s29 }
  0x40   : > { %p531_p10 = pnand %p529_p8, %p515_p0  ;;  %p537_p7 = scmp.lt.s32.totalorder %s535_s23, %s528_s27 }
  0x42   : > { %p532_p13 = pneg %p531_p10  ;;  %p538_p9 = por %p537_p7, %p536_p3 }
  0x44   : > { %p539_p2 = pnand %p538_p9, %p532_p13 }
  0x46   : > { %542 = shalt.err (!%p539_p2)
}
  0x47   : > { %436 = dma.hbm_to_vmem [thread:$0]  (!%p745_p11), %s743_s4, 128, %s749_s25, %s149_s5  }
  0x48   : > { %p860_p5 = scmp.ne.s32.totalorder %s855_s20, 0 }
  0x49   : > { %s779_s30 = sand.u32 (!%p860_p5), 1, %s605_s13   ;;  %p861_p0 = scmp.ne.s32.totalorder (!%p860_p5), %s853_s18, 0 }
  0x4a   : > { %168 = sbr.rel (%p860_p5) target bundleno = 334 (0x14e), region = 32  ;;  %s390_s22 = sshll.u32 (!%p860_p5), %s779_s30, 3 }
  0x4b   : > { %s171_s6 = scalar_lea.sflag (!%p860_p5), [#allocation3], %s779_s30  ;;  %s174_s7 = scalar_lea.vmem (!%p860_p5), [#allocation2], %s390_s22 }
  0x51   : > { %588 = dma.done.wait (%p861_p0), %s171_s6, 128  }
  0x52   : > { %590 = vsyncadd (%p861_p0), %s171_s6, 4294967168  ;;  %p862_p11 = scmp.eq.s32.totalorder %s664_s16, 0 }
  0x54   : > { %592 = dma.done.wait (%p862_p11), [#allocation6], 512   ;;  %p863_p1 = pmov %p862_p11 }
  0x55   : > { %v619_v0 = vmov 0.0|0.0   ;;  %vm620_vm0 = vmmov 0   ;;  %v621_v1 = vmov 0.0   ;;  %v202_v2 = vld [vmem:[#allocation5] sm:$0xff]  ;;  %v203_v3 = vld [vmem:[#allocation5 + $0x8] sm:$0xff]  ;;  %v204_v4 = vld [vmem:[#allocation5 + $0x10] sm:$0xff] }
  0x56   : > { %594 = vsyncadd (%p863_p1), [#allocation6], 4294966784  ;;  %415 = vmatprep.subr.bf16.mxu0 %v619_v0  ;;  %412 = vmatprep.mubr.msk.f32.mxu0 %vm620_vm0, %v621_v1  ;;  %v416_v5 = vpack.c.bf16 %v203_v3, %v202_v2  ;;  %v205_v6 = vld [vmem:[#allocation5 + $0x18] sm:$0xff]  ;;  %vm213_vm1 = vcmask 261120   ;;  %v393_v9 = vld [vmem:[%s848_s2] ss:$0 sm:$0xff] }
  0x57   : > { %v419_v7 = vpack.c.bf16 %v205_v6, %v204_v4  ;;  %v201_v8 = vld [vmem:[%s174_s7] sm:$0xff]  ;;  %s396_s4 = sshll.u32 %s664_s16, 7  ;;  %s200_s25 = scalar_lea.vmem [#allocation7], %s390_s22 }
  0x58   : > { %417 = vmatpush3.bf16.msra.mxu0 %v416_v5  ;;  %s303_s26 = sshll.u32 %s200_s25, 4  ;;  %s802_s9 = scalar_lea.hbm %s849_s3, %s396_s4  ;;  %s804_s26 = int_to_ptr.vmem [resolvable:$true] %s303_s26 }
  0x59   : > { %418 = vmatprep.subr.bf16.mxu0 %v619_v0  ;;  %s290_s10 = scalar_lea.sflag [#allocation4], %s779_s30  ;;  %s543_s11 = scalar_lea.vmem %s804_s26, 128 }
  0x5a   : > { %p544_p4 = scmp.ne.s32.totalorder %s804_s26, %s543_s11  ;;  %s622_s16 = smov [#allocation7]  }
  0x5b   : > { %s547_s27 = sshll.u32 %s622_s16, 4  ;;  %s548_s27 = int_to_ptr.vmem [resolvable:$false] %s547_s27 }
  0x5c   : > { %420 = vmatpush3.bf16.msra.mxu0 %v419_v7  ;;  %p545_p6 = pnand %p544_p4, %p734_p12  ;;  %s549_s28 = scalar_lea.vmem %s548_s27, 256 }
  0x5d   : > { %p550_p10 = scmp.lt.s32.totalorder %s804_s26, %s548_s27  ;;  %p551_p13 = scmp.lt.s32.totalorder %s549_s28, %s543_s11 }
  0x5e   : > { %p546_p8 = pneg %p545_p6 }
  0x5f   : > { %413 = vmatmul.mubr.msk.f32.vlgmr.msra.gmra.mrb[0].mxu0 %vm213_vm1, %v201_v8  ;;  %p552_p3 = por %p551_p13, %p550_p10 }
  0x61   : > { %p553_p7 = pnand %p552_p3, %p546_p8 }
 0x132   : > { %v283_v10 = vpop.f32.mrb[0].mxu0 }
 0x133   : > { %v284_v11 = vadd.f32 %v393_v9, %v283_v10  ;;  %v414_v12 = vpop.f32.mrb[1].mxu0 }
 0x135   : > { %483 = vtanh.f32 %v284_v11 }
 0x13f   : > { %v484_v13 = vpop.eup %483 }
 0x140   : > { %288 = vst.msk [vmem:[%s200_s25] sm:$0xff] %vm213_vm1, %v484_v13 }
 0x141   : > { %556 = shalt.err (!%p553_p7)
}
 0x142   : > { %s557_s29 = scalar_lea.hbm %s802_s9, 128  ;;  %s561_s22 = scalar_lea.hbm %s849_s3, 256 }
 0x143   : > { %p558_p9 = scmp.ne.s32.totalorder %s802_s9, %s557_s29  ;;  %p562_p0 = scmp.lt.u32.totalorder %s802_s9, %s849_s3 }
 0x144   : > { %p563_p11 = scmp.lt.u32.totalorder %s561_s22, %s557_s29  ;;  %p565_p4 = scmp.lt.u32.totalorder %s557_s29, %s802_s9 }
 0x145   : > { %p559_p2 = pnand %p558_p9, %p734_p12 }
 0x146   : > { %p564_p1 = por %p563_p11, %p562_p0 }
 0x147   : > { %p560_p5 = pneg %p559_p2 }
 0x148   : > { %p566_p6 = por %p565_p4, %p564_p1 }
 0x14a   : > { %p567_p8 = pnand %p566_p6, %p560_p5 }
 0x14c   : > { %570 = shalt.err (!%p567_p8)
}
 0x14d   : > { %427 = dma.vmem_to_hbm [thread:$0]  (%p734_p12), %s804_s26, 128, %s802_s9, %s290_s10  }
 0x14e PF: > { %s315_s18 = sand.u32 1, %s601_s12   ;;  %p864_p10 = scmp.ne.s32.totalorder %s854_s19, 0 }
 0x14f   : > { %p865_p13 = scmp.ge.s32.totalorder %s613_s15, 2  ;;  %s316_s20 = scalar_lea.sflag [#allocation4], %s315_s18 }
 0x151   : > { %p438_p3 = pnand %p865_p13, %p864_p10 }
 0x153   : > { %596 = dma.done.wait (!%p438_p3), %s316_s20, 128  }
 0x154   : > { %598 = vsyncadd (!%p438_p3), %s316_s20, 4294967168  ;;  %p17_p7 = scmp.ge.s32.totalorder %s699_s24, 4   ;;  %s866_s12 = smov %s605_s13 }
 0x155   : > { %s867_s13 = smov %s609_s14  ;;  %s868_s14 = smov %s730_s17 }
 0x156   : > { %s869_s15 = smov %s699_s24  ;;  %19 = sbr.rel (!%p17_p7) target bundleno = 6 (0x6), region = 81 }
 0x15d   :  { %321 = vsyncpa [#allocation3], 1 }
 0x15e   :  { %323 = vsyncpa [#allocation3 + $0x1], 1 }
 0x15f   :  { %324 = vsyncpa [#allocation6], 1 }
 0x160   :  { %325 = vsyncpa [#allocation4], 1 }
 0x161   :  { %327 = vsyncpa [#allocation4 + $0x1], 1 }

</bundles_post_ra>
